<compile_context>
chip_gen: v5e
topology: v5e:2x2
jax: 0.10.0
libtpu: 0.0.40
codegen_flags: <defaults>
</compile_context>

<pallas_src>
import numpy as np
import jax
import jax.numpy as jnp
from jax import lax
from jax.experimental import pallas as pl
from jax.experimental.pallas import tpu as pltpu


def _round_up(a, m):
    return (a + m - 1) // m * m


# ----------------------------------------------------------------------------
# Pallas kernel: per-(sample, P-tile) dynamic-conv matmul
# ----------------------------------------------------------------------------
def _dyn_conv_kernel(w_ref, cols_ref, out_ref):
    # w_ref:    (C_out, K_pad)  dynamic kernel, conv bias folded into col CKK
    # cols_ref: (K_pad, TP)     im2col patches (+ constant-1 bias row)
    # out_ref:  (C_out, TP)     lane-dense output tile (TP multiple of 128)
    out_ref[...] = jnp.dot(
        w_ref[...], cols_ref[...],
        preferred_element_type=jnp.float32).astype(out_ref.dtype)


def _im2col_t(x, k, stride, padding, dilation):
    """x: (B, C, H, W) -> cols: (B, C*k*k, H_out*W_out).

    Flatten order of the contraction dim is (c, kh, kw), matching PyTorch's
    OIHW weight flatten, and P = H_out*W_out is the trailing (lane) axis.
    """
    B, C, H, W = x.shape
    xp = jnp.pad(x, ((0, 0), (0, 0), (padding, padding), (padding, padding)))
    H_out = (H + 2 * padding - dilation * (k - 1) - 1) // stride + 1
    W_out = (W + 2 * padding - dilation * (k - 1) - 1) // stride + 1
    patches = []
    for ki in range(k):
        for kj in range(k):
            rs, cs = ki * dilation, kj * dilation
            patch = xp[:, :,
                       rs: rs + stride * (H_out - 1) + 1: stride,
                       cs: cs + stride * (W_out - 1) + 1: stride]  # (B,C,Ho,Wo)
            patches.append(patch)
    cols = jnp.stack(patches, axis=2)                   # (B, C, k*k, Ho, Wo)
    cols = cols.reshape(B, C * k * k, H_out * W_out)    # idx = c*k*k + ki*k + kj
    return cols, H_out, W_out


class DynamicConv2DPallas:
    """JAX/Pallas port of DynamicConv2D with deterministic parameter init."""

    def __init__(self, in_channels, out_channels, kernel_size,
                 stride=1, padding=0, dilation=1, groups=1, bias=True,
                 seed=0, compute_dtype=jnp.bfloat16):
        assert groups == 1, "groups != 1 not exercised here"
        self.cin, self.cout, self.k = in_channels, out_channels, kernel_size
        self.stride, self.padding, self.dilation = stride, padding, dilation
        self.compute_dtype = compute_dtype

        hid = in_channels // 4
        gen_out = out_channels * in_channels * kernel_size * kernel_size
        key = jax.random.PRNGKey(seed)
        k1, k2, k3, k4 = jax.random.split(key, 4)
        b1_bound = 1.0 / np.sqrt(in_channels)
        b2_bound = 1.0 / np.sqrt(hid)
        self.w1 = jax.random.uniform(k1, (hid, in_channels), jnp.float32,
                                     -b1_bound, b1_bound)
        self.b1 = jax.random.uniform(k2, (hid,), jnp.float32, -b1_bound, b1_bound)
        self.w2 = jax.random.uniform(k3, (gen_out, hid), jnp.float32,
                                     -b2_bound, b2_bound)
        self.b2 = jax.random.uniform(k4, (gen_out,), jnp.float32, -b2_bound, b2_bound)
        # dynamic-conv bias: torch.zeros(out_channels)
        self.bias = jnp.zeros((out_channels,), jnp.float32) if bias else None

    def generate_kernels(self, x):
        """kernel_generator(x).view(B, C_out, C_in*k*k) — tiny matvecs, plain JAX."""
        gap = x.mean(axis=(2, 3))                           # AdaptiveAvgPool2d(1)
        h = jax.nn.relu(gap @ self.w1.T + self.b1)          # 1x1 conv + ReLU
        kw = h @ self.w2.T + self.b2                        # 1x1 conv
        return kw.reshape(x.shape[0], self.cout, self.cin * self.k * self.k)

    def __call__(self, x):
        B, C, H, W = x.shape
        CKK = C * self.k * self.k
        cdt = self.compute_dtype

        kw = self.generate_kernels(x)                       # (B, C_out, CKK) f32

        # Cast activations to the compute dtype *before* im2col so the k^2-
        # inflated patch tensor is materialised at half width (bf16 path).
        xc = x.astype(cdt)
        cols, H_out, W_out = _im2col_t(xc, self.k, self.stride, self.padding,
                                       self.dilation)       # (B, CKK, P) cdt
        P = H_out * W_out

        # --- contraction dim padded to a multiple of 128 (+1 slot for bias) ---
        K_pad = _round_up(CKK + 1, 128)

        # --- lane-axis tile: as large as possible while keeping the
        #     double-buffered per-step blocks well under VMEM on every chip ---
        csize = jnp.dtype(cdt).itemsize
        osize = jnp.dtype(x.dtype).itemsize
        budget = 12 * 2**20
        tp_cap = 2048
        while tp_cap > 256 and (2 * K_pad * tp_cap * csize
                                + 2 * self.cout * K_pad * csize
                                + 2 * self.cout * tp_cap * osize) > budget:
            tp_cap -= 256
        TP = min(_round_up(P, 128), tp_cap)                 # multiple of 128
        P_pad = _round_up(P, TP)
        n_pt = P_pad // TP

        bias = (self.bias if self.bias is not None
                else jnp.zeros((self.cout,), jnp.float32))

        # Fold bias into the matmul: weights get an extra column = bias,
        # cols get a matching constant-1 row.  Remaining pad rows/cols = 0.
        w_aug = jnp.concatenate(
            [kw, jnp.broadcast_to(bias.reshape(1, self.cout, 1),
                                  (B, self.cout, 1))], axis=2)          # (B,Co,CKK+1)
        w_p = jnp.pad(w_aug, ((0, 0), (0, 0), (0, K_pad - CKK - 1)))
        w_p = w_p.astype(cdt)                                           # (B,Co,K_pad)

        ones_row = jnp.ones((B, 1, P), cdt)
        cols_aug = jnp.concatenate([cols, ones_row], axis=1)            # (B,CKK+1,P)
        cols_p = jnp.pad(cols_aug,
                         ((0, 0), (0, K_pad - CKK - 1), (0, P_pad - P)))  # (B,K_pad,P_pad)

        # VMEM budget (double-buffered blocks) with headroom; safe on v7x 64 MiB.
        per_step = (2 * K_pad * TP * csize + 2 * self.cout * K_pad * csize
                    + 2 * self.cout * TP * osize)
        vmem_limit = int(min(max(2 * per_step, 16 * 2**20), 48 * 2**20))

        flops = 2 * B * self.cout * K_pad * P_pad
        bytes_accessed = (B * self.cout * K_pad * csize
                          + B * K_pad * P_pad * csize
                          + B * self.cout * P_pad * osize)

        out = pl.pallas_call(
            _dyn_conv_kernel,
            out_shape=jax.ShapeDtypeStruct((B, self.cout, P_pad), x.dtype),
            grid_spec=pltpu.PrefetchScalarGridSpec(
                num_scalar_prefetch=0,
                grid=(B, n_pt),
                in_specs=[
                    # dynamic kernel: depends only on the batch index (DMA'd
                    # once per sample since the block index is p-invariant)
                    pl.BlockSpec((None, self.cout, K_pad), lambda b, p: (b, 0, 0)),
                    # im2col patches: (K_pad, TP) tile, P on lanes
                    pl.BlockSpec((None, K_pad, TP), lambda b, p: (b, 0, p)),
                ],
                out_specs=pl.BlockSpec((None, self.cout, TP),
                                       lambda b, p: (b, 0, p)),
            ),
            compiler_params=pltpu.CompilerParams(
                dimension_semantics=("parallel", "parallel"),
                vmem_limit_bytes=vmem_limit),
            cost_estimate=pl.CostEstimate(flops=flops, transcendentals=0,
                                          bytes_accessed=bytes_accessed),
        )(w_p, cols_p)

        if P_pad != P:
            out = out[:, :, :P]
        # (B, C_out, P) -> NCHW with a pure reshape (no transpose needed).
        return out.reshape(B, self.cout, H_out, W_out)


# ----------------------------------------------------------------------------
# Pure-JAX reference (per-sample lax.conv) to validate the Pallas path
# ----------------------------------------------------------------------------
def _reference(module, x):
    B = x.shape[0]
    kw = module.generate_kernels(x).reshape(B, module.cout, module.cin,
                                            module.k, module.k)

    def one(xi, wi):
        y = lax.conv_general_dilated(
            xi[None], wi,
            window_strides=(module.stride, module.stride),
            padding=[(module.padding, module.padding)] * 2,
            rhs_dilation=(module.dilation, module.dilation),
            dimension_numbers=("NCHW", "OIHW", "NCHW"))
        return y[0]

    out = jax.vmap(one)(x, kw)
    if module.bias is not None:
        out = out + module.bias[None, :, None, None]
    return out


if __name__ == "__main__":
    B, C_in, H, W = 2, 8, 16, 16
    C_out, ksz = 8, 3

    key = jax.random.PRNGKey(0)
    x = jax.random.normal(key, (B, C_in, H, W), jnp.float32)

    # f32 compute path: tight check against lax.conv reference
    mod_f32 = DynamicConv2DPallas(C_in, C_out, ksz, stride=1, padding=1,
                                  dilation=1, groups=1, bias=True, seed=0,
                                  compute_dtype=jnp.float32)
    ref = jax.block_until_ready(_reference(mod_f32, x))
    out_f32 = jax.block_until_ready(mod_f32(x))
    assert out_f32.shape == (B, C_out, H, W), out_f32.shape
    np.testing.assert_allclose(np.asarray(out_f32), np.asarray(ref),
                               rtol=1e-3, atol=1e-3)

    # bf16 operand path (default / fast on v6e-v7x): loose check (input rounding)
    mod_bf16 = DynamicConv2DPallas(C_in, C_out, ksz, stride=1, padding=1,
                                   dilation=1, groups=1, bias=True, seed=0,
                                   compute_dtype=jnp.bfloat16)
    out_bf16 = jax.block_until_ready(mod_bf16(x))
    assert out_bf16.shape == (B, C_out, H, W), out_bf16.shape
    np.testing.assert_allclose(np.asarray(out_bf16), np.asarray(ref),
                               rtol=5e-2, atol=2e-1)

    print("KERNEL_OK")
</pallas_src>

<mosaic_0001>
module attributes {stable_mosaic.version = 11 : i64} {
  func.func @_dyn_conv_kernel(%arg0: i32, %arg1: i32, %arg2: memref<1x8x128xf32, #tpu.memory_space<vmem>>, %arg3: memref<1x128x256xf32, #tpu.memory_space<vmem>>, %arg4: memref<1x8x256xf32, #tpu.memory_space<vmem>>) attributes {dimension_semantics = [#tpu.dimension_semantics<parallel>, #tpu.dimension_semantics<parallel>], iteration_bounds = array<i64: 2, 1>, scalar_prefetch = 0 : i64, scratch_operands = 0 : i64, tpu.core_type = #tpu.core_type<tc>, window_params = [{transform_indices = @transform_0, window_bounds = array<i64: 1, 8, 128>}, {transform_indices = @transform_1, window_bounds = array<i64: 1, 128, 256>}, {transform_indices = @transform_2, window_bounds = array<i64: 1, 8, 256>}]} {
    %c0 = arith.constant 0 : index
    %c0_0 = arith.constant 0 : index
    %c0_1 = arith.constant 0 : index
    %0 = vector.load %arg2[%c0, %c0_0, %c0_1] : memref<1x8x128xf32, #tpu.memory_space<vmem>>, vector<1x8x128xf32>
    %1 = vector.shape_cast %0 : vector<1x8x128xf32> to vector<8x128xf32>
    %c0_2 = arith.constant 0 : index
    %c0_3 = arith.constant 0 : index
    %c0_4 = arith.constant 0 : index
    %2 = vector.load %arg3[%c0_2, %c0_3, %c0_4] : memref<1x128x256xf32, #tpu.memory_space<vmem>>, vector<1x128x256xf32>
    %3 = vector.shape_cast %2 : vector<1x128x256xf32> to vector<128x256xf32>
    %cst = arith.constant dense<0.000000e+00> : vector<8x256xf32>
    %4 = tpu.matmul %1, %3, %cst {dimension_numbers = #tpu.dot_dimension_numbers<[1], [0], [0], [1], [0, 0, 1, 1], [], []>} : vector<8x128xf32>, vector<128x256xf32>, vector<8x256xf32> -> vector<8x256xf32>
    %c0_5 = arith.constant 0 : index
    %c0_6 = arith.constant 0 : index
    %c0_7 = arith.constant 0 : index
    %5 = vector.load %arg4[%c0_5, %c0_6, %c0_7] : memref<1x8x256xf32, #tpu.memory_space<vmem>>, vector<1x8x256xf32>
    %6 = vector.shape_cast %5 : vector<1x8x256xf32> to vector<8x256xf32>
    %7 = vector.shape_cast %4 : vector<8x256xf32> to vector<1x8x256xf32>
    tpu.vector_store %arg4[%c0_5, %c0_6, %c0_7], %7 {strides = array<i32>} : memref<1x8x256xf32, #tpu.memory_space<vmem>>, vector<1x8x256xf32>,
    return
  }
  func.func @transform_0(%arg0: i32, %arg1: i32) -> (i32, i32, i32) {
    %c0_i32 = arith.constant 0 : i32
    %c0_i32_0 = arith.constant 0 : i32
    %c0_i32_1 = arith.constant 0 : i32
    return %arg0, %c0_i32, %c0_i32_0 : i32, i32, i32
  }
  func.func @transform_1(%arg0: i32, %arg1: i32) -> (i32, i32, i32) {
    %c0_i32 = arith.constant 0 : i32
    %c0_i32_0 = arith.constant 0 : i32
    return %arg0, %c0_i32, %arg1 : i32, i32, i32
  }
  func.func @transform_2(%arg0: i32, %arg1: i32) -> (i32, i32, i32) {
    %c0_i32 = arith.constant 0 : i32
    %c0_i32_0 = arith.constant 0 : i32
    return %arg0, %c0_i32, %arg1 : i32, i32, i32
  }
}

</mosaic_0001>

<bundles_post_ra>
// kernel: tpu_custom_call.1
= control target key start
LH: loop header
LB: loop body
LE: loop exit
PB: predicated region body
PF: predicated region fallthrough
CT: control target
= control target key end

     0   :  { %7 = vsyncpa [#allocation3], 0  ;;  %s860_s0 = inlined_call_operand.hbm [shape: f32[2,8,128], index: 0, kind: input, shape index: {}]   ;;  %s861_s1 = inlined_call_operand.hbm [shape: f32[2,128,256], index: 1, kind: input, shape index: {}]   ;;  %s862_s2 = inlined_call_operand.hbm [shape: f32[2,8,256], index: 2, kind: output, shape index: {}]  }
   0x1   :  { %9 = vsyncpa [#allocation3 + $0x1], 0 }
   0x2   :  { %10 = vsyncpa [#allocation6], 0 }
   0x3   :  { %12 = vsyncpa [#allocation6 + $0x1], 0 }
   0x4   :  { %13 = vsyncpa [#allocation4], 0 }
   0x5   :  { %15 = vsyncpa [#allocation4 + $0x1], 0  ;;  %s678_s9 = smov 0   ;;  %s680_s10 = smov 0  }
   0x6   :  { %s682_s11 = smov 0   ;;  %s684_s12 = smov 0  }
   0x7   :  { %s686_s13 = smov 0   ;;  %s688_s14 = smov 0  }
   0x8 LB: > { %s424_s15 = sadd.s32 4294967295, %s659_s14   ;;  %s425_s16 = sadd.s32 4294967294, %s659_s14   ;;  %s659_s14 = sphi %s688_s14, %s21_s14   ;;  %s655_s13 = sphi %s686_s13, %s872_s13   ;;  %s651_s12 = sphi %s684_s12, %s871_s12   ;;  %s647_s11 = sphi %s682_s11, %s870_s11   ;;  %s643_s10 = sphi %s680_s10, %s869_s10   ;;  %s639_s9 = sphi %s678_s9, %s868_s9  }
   0x9   : > { %s33_s17 = sadd.s32 1, %s655_s13  ;;  %s40_s18 = sadd.s32 1, %s647_s11 }
   0xa   : > { %p35_p0 = scmp.ge.s32.totalorder %s33_s17, 2  ;;  %p47_p1 = scmp.ne.s32.totalorder %s647_s11, %s643_s10 }
   0xb   : > { %p48_p2 = scmp.eq.s32.totalorder %s659_s14, 0  ;;  %p53_p3 = scmp.ne.s32.totalorder %s643_s10, %s639_s9 }
   0xc   : > { %s874_s17 = smov (%p35_p0, %s33_s17), 0  ;;  %p54_p5 = scmp.eq.s32.totalorder %s424_s15, 0 }
   0xd   : > { %p719_p4 = por %p48_p2, %p47_p1  ;;  %s37_s20 = ssub.s32 %s655_s13, %s874_s17 }
   0xe   : > { %p107_p6 = scmp.eq.s32.totalorder %s424_s15, 1  ;;  %p38_p7 = scmp.eq.s32.totalorder %s37_s20, 0 }
   0xf   : > { %p725_p8 = por %p54_p5, %p53_p3  ;;  %p113_p10 = scmp.eq.s32.totalorder %s425_s16, 1 }
  0x10   : > { %p729_p9 = por %p107_p6, %p47_p1  ;;  %p427_p12 = scmp.ge.s32.totalorder %s659_s14, 2 }
  0x11   : > { %s734_s23 = scalar_select %p38_p7, %s647_s11, %s40_s18  }
  0x12   : > { %p736_p11 = por %p113_p10, %p53_p3  ;;  %p461_p13 = scmp.lt.s32.totalorder %s659_s14, 2 }
  0x13   : > { %s743_s25 = sand.u32 1, %s647_s11   ;;  %s429_s27 = sshll.u32 %s655_s13, 3 }
  0x14   : > { %s428_s26 = sshll.u32 %s743_s25, 3  ;;  %s141_s30 = scalar_lea.hbm %s860_s0, %s429_s27 }
  0x15   : > { %s137_s3 = scalar_lea.vmem [#allocation2], %s428_s26  ;;  %s143_s5 = sshll.u32 %s141_s30, 4  ;;  %s144_s5 = int_to_ptr.hbm [resolvable:$true] %s143_s5 }
  0x16   : > { %s145_s4 = sshll.u32 %s137_s3, 4  ;;  %p752_p0 = pnand %p461_p13, %p719_p4  ;;  %s146_s4 = int_to_ptr.vmem [resolvable:$true] %s145_s4 }
  0x17   : > { %p433_p1 = scmp.ge.s32.totalorder %s659_s14, 1  ;;  %p174_p2 = scmp.lt.s32.totalorder %s659_s14, 3 }
  0x18   : > { %s134_s7 = scalar_lea.sflag [#allocation3], %s743_s25  ;;  %s430_s8 = sshll.u32 %s743_s25, 8 }
  0x19   : > { %453 = dma.hbm_to_vmem [thread:$0]  (!%p752_p0), %s144_s5, 128, %s146_s4, %s134_s7  }
  0x1a   : > { %p175_p3 = pnand %p433_p1, %p174_p2  ;;  %s442_s15 = sshll.u32 %s655_s13, 8 }
  0x1b   : > { %s163_s20 = scalar_lea.hbm %s861_s1, %s442_s15  ;;  %s156_s26 = scalar_lea.vmem [#allocation5], %s430_s8 }
  0x1c   : > { %s166_s19 = sshll.u32 %s156_s26, 4  ;;  %s164_s27 = sshll.u32 %s163_s20, 4  ;;  %s167_s19 = int_to_ptr.vmem [resolvable:$true] %s166_s19  ;;  %s165_s27 = int_to_ptr.hbm [resolvable:$true] %s164_s27 }
  0x1d   : > { %s153_s28 = scalar_lea.sflag [#allocation6], %s743_s25  ;;  %s661_s29 = smov 256  }
  0x1e   : > { %s662_s30 = smov 16   ;;  %178 = sbr.rel (%p175_p3) target bundleno = 201 (0xc9), region = 28 }
  0x1f   : > { %456 = dma.hbm_to_vmem [thread:$0]  (!%p752_p0), %s165_s27, 4096, %s167_s19, %s153_s28, %s661_s29, %s661_s29, %s662_s30  }
  0x20   : > { %s770_s3 = sand.u32 (!%p175_p3), 1, %s643_s10  }
  0x21   : > { %s434_s4 = sshll.u32 (!%p175_p3), %s770_s3, 3  ;;  %s181_s5 = scalar_lea.sflag (!%p175_p3), [#allocation3], %s770_s3 }
  0x22   : > { %s774_s7 = scalar_lea.vmem (!%p175_p3), [#allocation2], %s434_s4 }
  0x23   : > { %626 = dma.done.wait (%p725_p8), %s181_s5, 128  }
  0x24   : > { %628 = vsyncadd (%p725_p8), %s181_s5, 4294967168  ;;  %s435_s25 = sshll.u32 %s770_s3, 8  ;;  %s191_s6 = scalar_lea.sflag [#allocation6], %s770_s3 }
  0x25   : > { %s782_s8 = scalar_lea.vmem [#allocation5], %s435_s25 }
  0x26   : > { %630 = dma.done.wait (%p725_p8), %s191_s6, 4096  }
  0x27   : > { %632 = vsyncadd (%p725_p8), %s191_s6, 4294963200  ;;  %v254_v0 = vld [vmem:[%s782_s8 + $0xf0] sm:$0xff]  ;;  %v255_v1 = vld [vmem:[%s782_s8 + $0xf8] sm:$0xff]  ;;  %s436_s21 = sshll.u32 %s770_s3, 4  ;;  %s443_s15 = sshll.u32 %s651_s12, 4 }
  0x28   : > { %v252_v2 = vld [vmem:[%s782_s8 + $0xe0] sm:$0xff]  ;;  %256 = vmatpush.msra.mxu0 %v254_v0  ;;  %276 = vmatpush.msra.mxu1 %v255_v1  ;;  %v253_v3 = vld [vmem:[%s782_s8 + $0xe8] sm:$0xff]  ;;  %v250_v4 = vld [vmem:[%s782_s8 + $0xd0] sm:$0xff]  ;;  %s312_s20 = scalar_lea.hbm %s862_s2, %s443_s15  ;;  %s220_s26 = scalar_lea.vmem [#allocation7], %s436_s21 }
  0x29   : > { %v251_v5 = vld [vmem:[%s782_s8 + $0xd8] sm:$0xff]  ;;  %v248_v6 = vld [vmem:[%s782_s8 + $0xc0] sm:$0xff]  ;;  %v249_v7 = vld [vmem:[%s782_s8 + $0xc8] sm:$0xff]  ;;  %s314_s19 = sshll.u32 %s220_s26, 4  ;;  %s316_s27 = sshll.u32 %s312_s20, 4  ;;  %s315_s19 = int_to_ptr.vmem [resolvable:$true] %s314_s19  ;;  %s317_s27 = int_to_ptr.hbm [resolvable:$true] %s316_s27 }
  0x2a   : > { %257 = vmatpush.msra.mxu0 %v252_v2  ;;  %277 = vmatpush.msra.mxu1 %v253_v3  ;;  %v246_v8 = vld [vmem:[%s782_s8 + $0xb0] sm:$0xff]  ;;  %v247_v9 = vld [vmem:[%s782_s8 + $0xb8] sm:$0xff]  ;;  %v244_v10 = vld [vmem:[%s782_s8 + $0xa0] sm:$0xff]  ;;  %s299_s28 = scalar_lea.sflag [#allocation4], %s770_s3  ;;  %s587_s29 = sshra.s32 %s317_s27, 4  ;;  %s588_s29 = int_to_ptr.hbm [resolvable:$true] %s587_s29 }
  0x2b   : > { %v245_v11 = vld [vmem:[%s782_s8 + $0xa8] sm:$0xff]  ;;  %v242_v12 = vld [vmem:[%s782_s8 + $0x90] sm:$0xff]  ;;  %v243_v13 = vld [vmem:[%s782_s8 + $0x98] sm:$0xff]  ;;  %s589_s30 = scalar_lea.hbm %s588_s29, 16  ;;  %s593_s5 = scalar_lea.hbm %s862_s2, 32 }
  0x2c   : > { %258 = vmatpush.msra.mxu0 %v250_v4  ;;  %278 = vmatpush.msra.mxu1 %v251_v5  ;;  %v240_v14 = vld [vmem:[%s782_s8 + $0x80] sm:$0xff]  ;;  %v241_v15 = vld [vmem:[%s782_s8 + $0x88] sm:$0xff]  ;;  %v238_v16 = vld [vmem:[%s782_s8 + $0x70] sm:$0xff]  ;;  %p590_p4 = scmp.ne.s32.totalorder %s588_s29, %s589_s30  ;;  %p594_p7 = scmp.lt.s32.totalorder %s588_s29, %s862_s2 }
  0x2d   : > { %v239_v17 = vld [vmem:[%s782_s8 + $0x78] sm:$0xff]  ;;  %v236_v18 = vld [vmem:[%s782_s8 + $0x60] sm:$0xff]  ;;  %v237_v19 = vld [vmem:[%s782_s8 + $0x68] sm:$0xff]  ;;  %p595_p8 = scmp.lt.s32.totalorder %s593_s5, %s589_s30 }
  0x2e   : > { %259 = vmatpush.msra.mxu0 %v248_v6  ;;  %279 = vmatpush.msra.mxu1 %v249_v7  ;;  %v234_v20 = vld [vmem:[%s782_s8 + $0x50] sm:$0xff]  ;;  %v235_v21 = vld [vmem:[%s782_s8 + $0x58] sm:$0xff]  ;;  %v232_v22 = vld [vmem:[%s782_s8 + $0x40] sm:$0xff]  ;;  %p591_p5 = pnand %p590_p4, %p729_p9 }
  0x2f   : > { %v233_v23 = vld [vmem:[%s782_s8 + $0x48] sm:$0xff]  ;;  %v230_v24 = vld [vmem:[%s782_s8 + $0x30] sm:$0xff]  ;;  %v231_v25 = vld [vmem:[%s782_s8 + $0x38] sm:$0xff]  ;;  %p596_p10 = por %p595_p8, %p594_p7 }
  0x30   : > { %260 = vmatpush.msra.mxu0 %v246_v8  ;;  %280 = vmatpush.msra.mxu1 %v247_v9  ;;  %v228_v26 = vld [vmem:[%s782_s8 + $0x20] sm:$0xff]  ;;  %v229_v27 = vld [vmem:[%s782_s8 + $0x28] sm:$0xff]  ;;  %v226_v28 = vld [vmem:[%s782_s8 + $0x10] sm:$0xff]  ;;  %p592_p6 = pneg %p591_p5 }
  0x31   : > { %v227_v29 = vld [vmem:[%s782_s8 + $0x18] sm:$0xff]  ;;  %v224_v30 = vld [vmem:[%s782_s8] sm:$0xff]  ;;  %v225_v31 = vld [vmem:[%s782_s8 + $0x8] sm:$0xff] }
  0x32   : > { %261 = vmatpush.msra.mxu0 %v244_v10  ;;  %281 = vmatpush.msra.mxu1 %v245_v11  ;;  %v223_v32 = vld [vmem:[%s774_s7] sm:$0xff]  ;;  %p597_p13 = pnand %p596_p10, %p592_p6 }
  0x34   : > { %262 = vmatpush.msra.mxu0 %v242_v12  ;;  %282 = vmatpush.msra.mxu1 %v243_v13 }
  0x36   : > { %263 = vmatpush.msra.mxu0 %v240_v14  ;;  %283 = vmatpush.msra.mxu1 %v241_v15 }
  0x38   : > { %264 = vmatpush.msra.mxu0 %v238_v16  ;;  %284 = vmatpush.msra.mxu1 %v239_v17 }
  0x3a   : > { %265 = vmatpush.msra.mxu0 %v236_v18  ;;  %285 = vmatpush.msra.mxu1 %v237_v19 }
  0x3c   : > { %266 = vmatpush.msra.mxu0 %v234_v20  ;;  %286 = vmatpush.msra.mxu1 %v235_v21 }
  0x3e   : > { %267 = vmatpush.msra.mxu0 %v232_v22  ;;  %287 = vmatpush.msra.mxu1 %v233_v23 }
  0x40   : > { %268 = vmatpush.msra.mxu0 %v230_v24  ;;  %288 = vmatpush.msra.mxu1 %v231_v25 }
  0x42   : > { %269 = vmatpush.msra.mxu0 %v228_v26  ;;  %289 = vmatpush.msra.mxu1 %v229_v27 }
  0x44   : > { %270 = vmatpush.msra.mxu0 %v226_v28  ;;  %290 = vmatpush.msra.mxu1 %v227_v29 }
  0x46   : > { %271 = vmatpush.msra.mxu0 %v224_v30  ;;  %291 = vmatpush.msra.mxu1 %v225_v31 }
  0x47   : > { %272 = vmatmul.f32.vlgmr.msra.gmra.mxu0 %v223_v32  ;;  %292 = vmatmul.f32.vlgmr.msra.gmra.mxu1 %v223_v32 }
  0xc4   : > { %v273_v33 = vpop.f32.mrf.mxu0  ;;  %v293_v34 = vpop.f32.mrf.mxu1 }
  0xc5   : > { %296 = vst [vmem:[%s220_s26] sm:$0xff] %v273_v33 }
  0xc6   : > { %297 = vst [vmem:[%s220_s26 + $0x8] sm:$0xff] %v293_v34 }
  0xc7   : > { %600 = shalt.err (!%p597_p13)
}
  0xc8   : > { %448 = dma.vmem_to_hbm [thread:$0]  (%p729_p9), %s315_s19, 256, %s317_s27, %s299_s28  }
  0xc9 PF: > { %s328_s3 = sand.u32 1, %s639_s9   ;;  %p458_p0 = pnand %p427_p12, %p736_p11 }
  0xca   : > { %s329_s6 = scalar_lea.sflag [#allocation4], %s328_s3 }
  0xcb   : > { %p459_p1 = pneg %p458_p0 }
  0xcd   : > { %634 = dma.done.wait (%p459_p1), %s329_s6, 256  }
  0xce   : > { %636 = vsyncadd (%p459_p1), %s329_s6, 4294967040  ;;  %s21_s14 = sadd.s32 1, %s659_s14   ;;  %s868_s9 = smov %s643_s10 }
  0xcf   : > { %p18_p2 = scmp.ge.s32.totalorder %s21_s14, 4   ;;  %s869_s10 = smov %s647_s11 }
  0xd0   : > { %s870_s11 = smov %s734_s23  ;;  %s871_s12 = smov %s655_s13 }
  0xd1   : > { %s872_s13 = smov %s874_s17  ;;  %20 = sbr.rel (!%p18_p2) target bundleno = 8 (0x8), region = 86 }
  0xd6   :  { %335 = vsyncpa [#allocation3], 1 }
  0xd7   :  { %337 = vsyncpa [#allocation3 + $0x1], 1 }
  0xd8   :  { %338 = vsyncpa [#allocation6], 1 }
  0xd9   :  { %340 = vsyncpa [#allocation6 + $0x1], 1 }
  0xda   :  { %341 = vsyncpa [#allocation4], 1 }
  0xdb   :  { %343 = vsyncpa [#allocation4 + $0x1], 1 }

</bundles_post_ra>
